<compile_context>
chip_gen: v7x
topology: tpu7x:2x2x1
jax: 0.10.0
libtpu: 0.0.40
codegen_flags: <defaults>
</compile_context>

<pallas_src>
import functools

import jax
import jax.numpy as jnp
from jax import lax
from jax.experimental import pallas as pl
from jax.experimental.pallas import tpu as pltpu

_EPS = 1e-12  # torch F.normalize default eps


def _cdiv(a, b):
    return -(-a // b)


def _round_up(x, m):
    return (x + m - 1) // m * m


def _infonce_kernel(img_ref, w_ref, text_ref, out_ref, acc_ref, *,
                    inv_t, n_rows, tile_n):
    c = pl.program_id(0)          # parallel slice (megacore on v7x)
    i = pl.program_id(1)          # row-tile within the slice

    @pl.when(i == 0)
    def _init():
        acc_ref[...] = jnp.zeros_like(acc_ref)

    # Raw bf16 img tile straight into the MXU (text is already L2-normalized,
    # scaled by 1/T and transposed to (D, M) bf16 in the wrapper).
    x = img_ref[...]                                               # (tn, D) bf16
    raw = jnp.dot(x, text_ref[...],
                  preferred_element_type=jnp.float32)              # (tn, M) f32

    # Post-matmul row normalization: logits = raw / max(||x||, eps).
    xf = x.astype(jnp.float32)
    ss = jnp.sum(xf * xf, axis=-1, keepdims=True)                  # (tn, 1) f32
    logits = raw * lax.rsqrt(jnp.maximum(ss, jnp.float32(_EPS * _EPS)))

    # Shift by the max possible logit (1/T): exp never overflows f32 and the
    # shift cancels exactly in log(s_all) - log(s_noise).
    p = jnp.exp(logits - jnp.float32(inv_t))
    row_sum = jnp.sum(p, axis=-1, keepdims=True)                   # (tn, 1)

    # Mask rows past N: img is NOT padded, so the last tile (and fully
    # out-of-range tiles of the parallel split) may hold garbage.  Use
    # where() (not a multiply) so NaN/Inf garbage cannot poison the sums.
    row_start = (c * pl.num_programs(1) + i) * tile_n
    row_ids = row_start + lax.broadcasted_iota(jnp.int32, (tile_n, 1), 0)
    contrib = jnp.where(row_ids < n_rows, row_sum * w_ref[...], 0.0)  # (tn, 2)
    acc_ref[...] += jnp.sum(contrib, axis=0, keepdims=True)           # (1, 2)

    @pl.when(i == pl.num_programs(1) - 1)
    def _finalize():
        # Emit this slice's partial [s_all, s_noise] in lanes 0/1 of an
        # (8, 128)-aligned block; the final log-ratio is computed in JAX.
        lane = lax.broadcasted_iota(jnp.int32, (1, 8, 128), 2)
        tile = jnp.where(lane == 0, acc_ref[0, 0],
                         jnp.where(lane == 1, acc_ref[0, 1], 0.0))
        out_ref[...] = tile.astype(out_ref.dtype)


def _vmem_budget_bytes():
    try:
        cap = int(pltpu.get_tpu_info().vmem_capacity_bytes)
    except Exception:
        cap = 64 * 1024 * 1024          # conservative (v7x-sized) fallback
    # ~3/4 of physical VMEM: ~96 MiB on v5e/v6e (128 MiB), ~48 MiB on v7x (64 MiB).
    return max(32 * 1024 * 1024, min((cap * 3) // 4, 100 * 1024 * 1024))


def _choose_tile_n(n, d, m, budget_bytes):
    # Per-row cost: double-buffered bf16 img tile, f32 weights, an f32 copy of
    # the tile for sum-of-squares, and ~3x the (tn, M) f32 logits working set.
    per_row = 2 * d * 2 + 2 * 2 * 4 + d * 4 + 3 * m * 4
    fixed = d * m * 2 + (1 << 20)       # resident bf16 text + slack
    tn = (budget_bytes - fixed) // per_row
    tn = min(int(tn), 2048, _round_up(n, 16))
    return max(16, (tn // 16) * 16)


def infonce_loss(img_features, noise_idxs, text_feature, temperature=1.0,
                 *, tile_n=None):
    N, D = img_features.shape
    M = text_feature.shape[0]
    inv_t = float(1.0 / temperature)

    budget = _vmem_budget_bytes()
    tn = int(tile_n) if tile_n is not None else _choose_tile_n(N, D, M, budget)
    tn = max(16, (tn // 16) * 16)       # bf16 sublane packing: multiple of 16

    n_img_tiles = _cdiv(N, tn)
    num_parallel = 2 if n_img_tiles >= 2 else 1     # feed both v7x TensorCores
    tiles_per_part = _cdiv(n_img_tiles, num_parallel)
    total_tiles = num_parallel * tiles_per_part
    rows_pad = total_tiles * tn

    # The only O(N*D) HBM stream: bf16, un-padded (tail masked in-kernel).
    img_bf16 = img_features.astype(jnp.bfloat16)

    # Per-row weights: [:, 0] = 1 for real rows, [:, 1] = multiplicity in noise_idxs.
    valid = (jnp.arange(rows_pad) < N).astype(jnp.float32)
    counts = jnp.zeros((rows_pad,), jnp.float32).at[noise_idxs].add(1.0)
    weights = jnp.stack([valid, counts], axis=1)                    # (rows_pad, 2)

    # text: normalize, fold 1/T, cast bf16, transpose to (D, M).
    tf = text_feature.astype(jnp.float32)
    tss = jnp.sum(tf * tf, axis=1, keepdims=True)
    text_n = tf * lax.rsqrt(jnp.maximum(tss, jnp.float32(_EPS * _EPS)))
    text_t = jnp.transpose((text_n * inv_t).astype(jnp.bfloat16))   # (D, M)

    def img_index_map(c, i):
        t = c * tiles_per_part + i
        return (jnp.minimum(t, n_img_tiles - 1), 0)   # keep every DMA in bounds

    kernel = functools.partial(_infonce_kernel, inv_t=inv_t, n_rows=N, tile_n=tn)
    partials = pl.pallas_call(
        kernel,
        out_shape=jax.ShapeDtypeStruct((num_parallel, 8, 128), jnp.float32),
        grid_spec=pltpu.PrefetchScalarGridSpec(
            num_scalar_prefetch=0,
            grid=(num_parallel, tiles_per_part),
            in_specs=[
                pl.BlockSpec((tn, D), img_index_map),                     # img tile (pipelined, bf16)
                pl.BlockSpec((tn, 2), lambda c, i: (c * tiles_per_part + i, 0)),
                pl.BlockSpec((D, M), lambda c, i: (0, 0),
                             pipeline_mode=pl.Buffered(1)),               # resident text, single copy
            ],
            out_specs=pl.BlockSpec((1, 8, 128), lambda c, i: (c, 0, 0)),
            scratch_shapes=[pltpu.VMEM((1, 2), jnp.float32)],             # [s_all, s_noise]
        ),
        compiler_params=pltpu.CompilerParams(
            dimension_semantics=("parallel", "arbitrary"),
            vmem_limit_bytes=int(budget),
        ),
        cost_estimate=pl.CostEstimate(
            flops=2 * N * M * D,
            transcendentals=N * M,
            bytes_accessed=N * D * 2 + D * M * 2 + rows_pad * 2 * 4
                           + num_parallel * 8 * 128 * 4,
        ),
    )(img_bf16, weights, text_t)

    s_all = jnp.sum(partials[:, 0, 0])
    s_noise = jnp.sum(partials[:, 0, 1])
    # loss = -log(s_noise / s_all) = log(s_all) - log(s_noise)
    return jnp.log(s_all) - jnp.log(s_noise)


def _reference_loss(img_features, noise_idxs, text_feature, temperature=1.0):
    # Direct f32 port of the torch module.
    def norm(x):
        n = jnp.sqrt(jnp.sum(x * x, axis=1, keepdims=True))
        return x / jnp.maximum(n, _EPS)
    img_n = norm(img_features.astype(jnp.float32))
    text_n = norm(text_feature.astype(jnp.float32))
    noise_n = norm(img_n[noise_idxs])
    sim_noise = jnp.sum(jnp.exp(noise_n @ text_n.T / temperature))
    sim = jnp.sum(jnp.exp(img_n @ text_n.T / temperature))
    return -jnp.log(sim_noise / sim)


if __name__ == "__main__":
    key = jax.random.PRNGKey(0)
    k_img, k_txt, k_idx = jax.random.split(key, 3)

    N, D, M, K = 48, 128, 8, 8
    img_features = jax.random.normal(k_img, (N, D), dtype=jnp.float32)
    text_feature = jax.random.normal(k_txt, (M, D), dtype=jnp.float32)
    noise_idxs = jax.random.randint(k_idx, (K,), 0, N, dtype=jnp.int32)

    temperature = 0.5
    # tile_n=16 -> 3 row tiles split over a 2-way parallel axis: exercises
    # init / accumulate / finalize, the parallel split, block-index clamping
    # and the in-kernel row mask (48 rows, 4 logical tiles of 16).
    loss = infonce_loss(img_features, noise_idxs, text_feature, temperature,
                        tile_n=16)
    loss = jax.block_until_ready(loss)

    ref = _reference_loss(img_features, noise_idxs, text_feature, temperature)
    # bf16 MXU operands => slightly relaxed tolerance vs the pure-f32 reference.
    assert jnp.allclose(loss, ref, atol=2e-2, rtol=2e-2), (loss, ref)

    print("KERNEL_OK")
</pallas_src>

<mosaic_0001>
module attributes {stable_mosaic.version = 11 : i64} {
  func.func @_infonce_kernel(%arg0: i32, %arg1: i32, %arg2: memref<16x128xbf16, #tpu.memory_space<vmem>>, %arg3: memref<16x2xf32, #tpu.memory_space<vmem>>, %arg4: memref<128x8xbf16, #tpu.memory_space<vmem>>, %arg5: memref<1x8x128xf32, #tpu.memory_space<vmem>>, %arg6: memref<1x2xf32, #tpu.memory_space<vmem>>) attributes {dimension_semantics = [#tpu.dimension_semantics<parallel>, #tpu.dimension_semantics<arbitrary>], iteration_bounds = array<i64: 2, 2>, scalar_prefetch = 0 : i64, scratch_operands = 1 : i64, tpu.core_type = #tpu.core_type<tc>, window_params = [{transform_indices = @transform_0, window_bounds = array<i64: 16, 128>}, {transform_indices = @transform_1, window_bounds = array<i64: 16, 2>}, {pipeline_mode = #tpu.pipeline_mode<synchronous>, transform_indices = @transform_2, window_bounds = array<i64: 128, 8>}, {transform_indices = @transform_3, window_bounds = array<i64: 1, 8, 128>}]} {
    %c0_i32 = arith.constant 0 : i32
    %0 = arith.cmpi eq, %arg1, %c0_i32 : i32
    %1 = arith.extui %0 : i1 to i32
    %c0_i32_0 = arith.constant 0 : i32
    %2 = arith.cmpi ne, %1, %c0_i32_0 : i32
    scf.if %2 {
      %cst_17 = arith.constant 0.000000e+00 : f32
      %43 = vector.broadcast %cst_17 : f32 to vector<1x2xf32>
      %c0_18 = arith.constant 0 : index
      %c0_19 = arith.constant 0 : index
      %44 = vector.load %arg6[%c0_18, %c0_19] : memref<1x2xf32, #tpu.memory_space<vmem>>, vector<1x2xf32>
      tpu.vector_store %arg6[%c0_18, %c0_19], %43 {strides = array<i32>} : memref<1x2xf32, #tpu.memory_space<vmem>>, vector<1x2xf32>,
    } else {
    }
    %c0 = arith.constant 0 : index
    %c0_1 = arith.constant 0 : index
    %3 = vector.load %arg2[%c0, %c0_1] : memref<16x128xbf16, #tpu.memory_space<vmem>>, vector<16x128xbf16>
    %c0_2 = arith.constant 0 : index
    %c0_3 = arith.constant 0 : index
    %4 = vector.load %arg4[%c0_2, %c0_3] : memref<128x8xbf16, #tpu.memory_space<vmem>>, vector<128x8xbf16>
    %cst = arith.constant dense<0.000000e+00> : vector<16x8xf32>
    %5 = tpu.matmul %3, %4, %cst {dimension_numbers = #tpu.dot_dimension_numbers<[1], [0], [0], [1], [0, 0, 1, 1], [], []>} : vector<16x128xbf16>, vector<128x8xbf16>, vector<16x8xf32> -> vector<16x8xf32>
    %6 = arith.extf %3 : vector<16x128xbf16> to vector<16x128xf32>
    %7 = arith.mulf %6, %6 : vector<16x128xf32>
    %cst_4 = arith.constant dense<0.000000e+00> : vector<16xf32>
    %8 = vector.multi_reduction <add>, %7, %cst_4 [1] : vector<16x128xf32> to vector<16xf32>
    %9 = vector.shape_cast %8 : vector<16xf32> to vector<16x1xf32>
    %cst_5 = arith.constant 1.000000e-24 : f32
    %10 = vector.broadcast %cst_5 : f32 to vector<16x1xf32>
    %11 = arith.maximumf %9, %10 : vector<16x1xf32>
    %12 = math.rsqrt %11 : vector<16x1xf32>
    %13 = vector.broadcast %12 : vector<16x1xf32> to vector<16x8xf32>
    %14 = arith.mulf %5, %13 : vector<16x8xf32>
    %cst_6 = arith.constant 2.000000e+00 : f32
    %15 = vector.broadcast %cst_6 : f32 to vector<16x8xf32>
    %16 = arith.subf %14, %15 : vector<16x8xf32>
    %17 = math.exp %16 : vector<16x8xf32>
    %cst_7 = arith.constant dense<0.000000e+00> : vector<16xf32>
    %18 = vector.multi_reduction <add>, %17, %cst_7 [1] : vector<16x8xf32> to vector<16xf32>
    %19 = vector.shape_cast %18 : vector<16xf32> to vector<16x1xf32>
    %c2_i32 = arith.constant 2 : i32
    %20 = arith.muli %arg0, %c2_i32 : i32
    %21 = arith.addi %20, %arg1 : i32
    %c16_i32 = arith.constant 16 : i32
    %22 = arith.muli %21, %c16_i32 : i32
    %23 = tpu.iota {dimensions = array<i32: 0>} : vector<16x1xi32>
    %24 = vector.broadcast %22 : i32 to vector<16x1xi32>
    %25 = arith.addi %24, %23 : vector<16x1xi32>
    %c48_i32 = arith.constant 48 : i32
    %26 = vector.broadcast %c48_i32 : i32 to vector<16x1xi32>
    %27 = arith.cmpi slt, %25, %26 : vector<16x1xi32>
    %c0_8 = arith.constant 0 : index
    %c0_9 = arith.constant 0 : index
    %28 = vector.load %arg3[%c0_8, %c0_9] : memref<16x2xf32, #tpu.memory_space<vmem>>, vector<16x2xf32>
    %29 = vector.broadcast %19 : vector<16x1xf32> to vector<16x2xf32>
    %30 = arith.mulf %29, %28 : vector<16x2xf32>
    %cst_10 = arith.constant 0.000000e+00 : f32
    %31 = vector.shape_cast %27 : vector<16x1xi1> to vector<16x1xi1>
    %32 = vector.broadcast %31 : vector<16x1xi1> to vector<16x2xi1>
    %33 = vector.broadcast %cst_10 : f32 to vector<16x2xf32>
    %34 = arith.select %32, %30, %33 : vector<16x2xi1>, vector<16x2xf32>
    %c0_11 = arith.constant 0 : index
    %c0_12 = arith.constant 0 : index
    %35 = vector.load %arg6[%c0_11, %c0_12] : memref<1x2xf32, #tpu.memory_space<vmem>>, vector<1x2xf32>
    %cst_13 = arith.constant dense<0.000000e+00> : vector<2xf32>
    %36 = vector.multi_reduction <add>, %34, %cst_13 [0] : vector<16x2xf32> to vector<2xf32>
    %37 = vector.shape_cast %36 : vector<2xf32> to vector<1x2xf32>
    %38 = arith.addf %35, %37 : vector<1x2xf32>
    %c0_14 = arith.constant 0 : index
    %c0_15 = arith.constant 0 : index
    %39 = vector.load %arg6[%c0_14, %c0_15] : memref<1x2xf32, #tpu.memory_space<vmem>>, vector<1x2xf32>
    tpu.vector_store %arg6[%c0_14, %c0_15], %38 {strides = array<i32>} : memref<1x2xf32, #tpu.memory_space<vmem>>, vector<1x2xf32>,
    %c1_i32 = arith.constant 1 : i32
    %40 = arith.cmpi eq, %arg1, %c1_i32 : i32
    %41 = arith.extui %40 : i1 to i32
    %c0_i32_16 = arith.constant 0 : i32
    %42 = arith.cmpi ne, %41, %c0_i32_16 : i32
    scf.if %42 {
      %43 = tpu.iota {dimensions = array<i32: 2>} : vector<1x8x128xi32>
      %c0_i32_17 = arith.constant 0 : i32
      %44 = vector.broadcast %c0_i32_17 : i32 to vector<1x8x128xi32>
      %45 = arith.cmpi eq, %43, %44 : vector<1x8x128xi32>
      %c0_18 = arith.constant 0 : index
      %c0_19 = arith.constant 0 : index
      %46 = vector.load %arg6[%c0_18, %c0_19] : memref<1x2xf32, #tpu.memory_space<vmem>>, vector<1x1xf32>
      %47 = vector.extract %46[0, 0] : f32 from vector<1x1xf32>
      %c1_i32_20 = arith.constant 1 : i32
      %48 = vector.broadcast %c1_i32_20 : i32 to vector<1x8x128xi32>
      %49 = arith.cmpi eq, %43, %48 : vector<1x8x128xi32>
      %c0_21 = arith.constant 0 : index
      %c1 = arith.constant 1 : index
      %50 = vector.load %arg6[%c0_21, %c1] : memref<1x2xf32, #tpu.memory_space<vmem>>, vector<1x1xf32>
      %51 = vector.extract %50[0, 0] : f32 from vector<1x1xf32>
      %cst_22 = arith.constant 0.000000e+00 : f32
      %52 = vector.broadcast %51 : f32 to vector<1x8x128xf32>
      %53 = vector.broadcast %cst_22 : f32 to vector<1x8x128xf32>
      %54 = arith.select %49, %52, %53 : vector<1x8x128xi1>, vector<1x8x128xf32>
      %55 = vector.broadcast %47 : f32 to vector<1x8x128xf32>
      %56 = arith.select %45, %55, %54 : vector<1x8x128xi1>, vector<1x8x128xf32>
      %c0_23 = arith.constant 0 : index
      %c0_24 = arith.constant 0 : index
      %c0_25 = arith.constant 0 : index
      %57 = vector.load %arg5[%c0_23, %c0_24, %c0_25] : memref<1x8x128xf32, #tpu.memory_space<vmem>>, vector<1x8x128xf32>
      tpu.vector_store %arg5[%c0_23, %c0_24, %c0_25], %56 {strides = array<i32>} : memref<1x8x128xf32, #tpu.memory_space<vmem>>, vector<1x8x128xf32>,
    } else {
    }
    return
  }
  func.func @transform_0(%arg0: i32, %arg1: i32) -> (i32, i32) {
    %c2_i32 = arith.constant 2 : i32
    %0 = arith.muli %arg0, %c2_i32 : i32
    %1 = arith.addi %0, %arg1 : i32
    %c2_i32_0 = arith.constant 2 : i32
    %2 = arith.minsi %1, %c2_i32_0 : i32
    %c0_i32 = arith.constant 0 : i32
    %c0_i32_1 = arith.constant 0 : i32
    return %2, %c0_i32 : i32, i32
  }
  func.func @transform_1(%arg0: i32, %arg1: i32) -> (i32, i32) {
    %c2_i32 = arith.constant 2 : i32
    %0 = arith.muli %arg0, %c2_i32 : i32
    %1 = arith.addi %0, %arg1 : i32
    %c0_i32 = arith.constant 0 : i32
    %c0_i32_0 = arith.constant 0 : i32
    return %1, %c0_i32 : i32, i32
  }
  func.func @transform_2(%arg0: i32, %arg1: i32) -> (i32, i32) {
    %c0_i32 = arith.constant 0 : i32
    %c0_i32_0 = arith.constant 0 : i32
    %c0_i32_1 = arith.constant 0 : i32
    return %c0_i32, %c0_i32_0 : i32, i32
  }
  func.func @transform_3(%arg0: i32, %arg1: i32) -> (i32, i32, i32) {
    %c0_i32 = arith.constant 0 : i32
    %c0_i32_0 = arith.constant 0 : i32
    %c0_i32_1 = arith.constant 0 : i32
    return %arg0, %c0_i32, %c0_i32_0 : i32, i32, i32
  }
}

</mosaic_0001>

<bundles_post_ra>
// kernel: tpu_custom_call.1
= control target key start
LH: loop header
LB: loop body
LE: loop exit
PB: predicated region body
PF: predicated region fallthrough
CT: control target
= control target key end

     0   :  { %8 = vsyncpa [#allocation4], 0  ;;  %s1003_s0 = inlined_call_operand.vmem [shape: bf16[48,128], index: 0, kind: input, shape index: {}]   ;;  %s1004_s1 = inlined_call_operand.vmem [shape: f32[64,2], index: 1, kind: input, shape index: {}]   ;;  %s1005_s2 = inlined_call_operand.vmem [shape: bf16[128,8], index: 2, kind: input, shape index: {}]   ;;  %s1006_s3 = inlined_call_operand.hbm [shape: f32[2,8,128], index: 3, kind: output, shape index: {}]  }
   0x1   :  { %10 = vsyncpa [#allocation4 + $0x1], 0  ;;  %s827_s12 = smov 0   ;;  %s829_s13 = smov 0  }
   0x2   :  { %s831_s14 = smov 0   ;;  %s833_s15 = smov 0  }
   0x3   :  { %s835_s16 = smov 0   ;;  %s837_s17 = smov 0  }
   0x4   :  { %s839_s18 = smov 0   ;;  %s841_s19 = smov 0  }
   0x5 LB: > { %s545_s20 = sadd.s32 4294967295, %s800_s19   ;;  %s546_s21 = sadd.s32 4294967294, %s800_s19   ;;  %s800_s19 = sphi %s841_s19, %s16_s19   ;;  %s796_s18 = sphi %s839_s18, %s1017_s18   ;;  %s792_s17 = sphi %s837_s17, %s1016_s17   ;;  %s788_s16 = sphi %s835_s16, %s1015_s16   ;;  %s784_s15 = sphi %s833_s15, %s1014_s15   ;;  %s780_s14 = sphi %s831_s14, %s1013_s14   ;;  %s776_s13 = sphi %s829_s13, %s1012_s13   ;;  %s772_s12 = sphi %s827_s12, %s1011_s12  }
   0x6   : > { %s25_s22 = sadd.s32 1, %s792_s17  ;;  %s28_s23 = sadd.s32 1, %s796_s18 }
   0x7   : > { %p26_p0 = scmp.ge.s32.totalorder %s25_s22, 2  ;;  %p130_p1 = scmp.ne.s32.totalorder %s780_s14, %s776_s13 }
   0x8   : > { %p131_p2 = scmp.eq.s32.totalorder %s545_s20, 3  ;;  %p136_p4 = scmp.ne.s32.totalorder %s776_s13, %s772_s12 }
   0x9   : > { %s1019_s22 = smov (%p26_p0, %s25_s22), 0  ;;  %s1021_s23 = smov (!%p26_p0, %s28_s23), %s796_s18 }
   0xa   : > { %p876_p3 = por %p131_p2, %p130_p1  ;;  %p30_p5 = scmp.ge.s32.totalorder %s1021_s23, 2 }
   0xb   : > { %p137_p6 = scmp.eq.s32.totalorder %s546_s21, 3  ;;  %p553_p7 = scmp.ge.s32.totalorder %s800_s19, 1 }
   0xc   : > { %p188_p8 = scmp.lt.s32.totalorder %s800_s19, 5  ;;  %s1023_s23 = smov (%p30_p5, %s1021_s23), 0 }
   0xd   : > { %p886_p9 = por %p137_p6, %p136_p4  ;;  %s117_s26 = ssub.s32 %s796_s18, %s1023_s23 }
   0xe   : > { %p189_p10 = pnand %p553_p7, %p188_p8  ;;  %s120_s27 = sadd.s32 1, %s780_s14 }
   0xf   : > { %p118_p11 = scmp.eq.s32.totalorder %s117_s26, 0  ;;  %s1007_s29 = sand.u32 (!%p189_p10), 1, %s776_s13  }
  0x10   : > { %192 = sbr.rel (%p189_p10) target bundleno = 662 (0x296), region = 32  ;;  %s555_s30 = sshll.u32 (!%p189_p10), %s788_s16, 1 }
  0x11   : > { %s894_s28 = scalar_select %p118_p11, %s780_s14, %s120_s27  }
  0x12   : > { %s900_s4 = sshll.u32 (!%p189_p10), %s1007_s29, 3  ;;  %s903_s5 = sadd.s32 (!%p189_p10), %s784_s15, %s555_s30 }
  0x13   : > { %p225_p12 = scmp.lt.s32.totalorder (!%p189_p10), %s903_s5, 2  ;;  %s559_s6 = sshll.u32 (!%p189_p10), %s903_s5, 1 }
  0x14   : > { %p240_p13 = scmp.lt.s32.totalorder (!%p189_p10), %s559_s6, 7  ;;  %s222_s29 = scalar_lea.vmem (!%p189_p10), [#allocation3], %s900_s4 }
  0x15   : > { %p561_p1 = scmp.ne.s32.totalorder (!%p189_p10), %s784_s15, 0 }
  0x17   : > { %s226_s7 = scalar_select %p225_p12, %s903_s5, 2 }
  0x18   : > { %s1025_s6 = smov (!%p240_p13, %s559_s6), 7  ;;  %251 = sbr.rel (%p561_p1) target bundleno = 31 (0x1f), region = 36 }
  0x19   : > { %s556_s8 = sshll.u32 %s226_s7, 1  ;;  %s560_s9 = sshll.u32 %s1025_s6, 3  ;;  %vm252_vm0 = vcmask (!%p561_p1), 8192   ;;  %v802_v0 = vmov (!%p561_p1), 0.0  }
  0x1a   : > { %p228_p0 = scmp.lt.s32.totalorder %s556_s8, 5  ;;  %s911_s21 = scalar_lea.vmem %s1004_s1, %s560_s9  ;;  %253 = vst.msk [vmem:[#allocation2] sm:$0x1] (!%p561_p1), %vm252_vm0, %v802_v0 }
  0x1c   : > { %s1027_s8 = smov (!%p228_p0, %s556_s8), 5 }
  0x1d   : > { %s557_s10 = sshll.u32 %s1027_s8, 2 }
  0x1e   : > { %s231_s30 = scalar_lea.vmem %s1003_s0, %s557_s10 }
  0x1f PF: > { %v688_v1 = vld [vmem:[%s1005_s2] sm:$0xff]   ;;  %v803_v2 = vmov 0.0   ;;  %v689_v3 = vld [vmem:[%s1005_s2 + $0x8] sm:$0xff]   ;;  %vm804_vm1 = vmmov 0   ;;  %v690_v4 = vld [vmem:[%s1005_s2 + $0x10] sm:$0xff]   ;;  %vm387_vm2 = vcmask 64512   ;;  %v397_v35 = vlaneseq }
  0x20   : > { %589 = vmatprep.subr.bf16.mxu0 %v803_v2  ;;  %605 = vmatprep.mubr.msk.bf16.mxu0 %vm804_vm1, %v803_v2  ;;  %v254_v5 = vld [vmem:[%s231_s30] sm:$0xff]   ;;  %v691_v8 = vld [vmem:[%s1005_s2 + $0x18] sm:$0xff]   ;;  %v693_v12 = vld [vmem:[%s1005_s2 + $0x28] sm:$0xff]   ;;  %s574_s20 = sshll.u32 %s903_s5, 4  ;;  %vm416_vm5 = vcmask 15360   ;;  %vm427_vm6 = vcmask 8192  }
  0x21   : > { %590 = vmatpush3.bf16.msra.mxu0 %v688_v1  ;;  %v367_v6 = vunpack.c.l.bf16 %v254_v5  ;;  %v368_v7 = vunpack.c.h.bf16 %v254_v5  ;;  %v692_v11 = vld [vmem:[%s1005_s2 + $0x20] sm:$0xff]   ;;  %v694_v13 = vld [vmem:[%s1005_s2 + $0x30] sm:$0xff]   ;;  %v695_v14 = vld [vmem:[%s1005_s2 + $0x38] sm:$0xff]   ;;  %v398_v36 = vshrl.u32 %v397_v35, 7  ;;  %v400_v37 = vstv %s574_s20  ;;  %p575_p2 = scmp.ne.s32.totalorder %s784_s15, 1 }
  0x22   : > { %591 = vmatprep.subr.bf16.mxu0 %v803_v2  ;;  %v405_v40 = vld [vmem:[%s911_s21] sm:$0xff]  ;;  %v406_v44 = vld [vmem:[%s911_s21 + $0x8] sm:$0xff]  ;;  %s805_s5 = smov (!%p575_p2), 127   ;;  %v434_v62 = vand.u32 (!%p575_p2), 127, %v397_v35 }
  0x23   : > { %v369_v9 = vmul.f32 %v367_v6, %v367_v6  ;;  %v370_v10 = vmul.f32 %v368_v7, %v368_v7  ;;  %v399_v38 = vadd.s32 8, %v398_v36  ;;  %v401_v39 = vadd.s32 %v400_v37, %v398_v36  ;;  %v415_v57 = vld [vmem:[#allocation2] sm:$0x1] }
  0x24   : > { %vm438_vm7 = vcmp.eq.s32.totalorder (!%p575_p2), %v434_v62, 1  ;;  %vm435_vm8 = vcmp.eq.s32.totalorder (!%p575_p2), %v434_v62, 0 }
  0x25   : > { %592 = vmatpush3.bf16.msra.mxu0 %v689_v3  ;;  %371 = vadd.xlane.f32.xlu0 %v369_v9  ;;  %v402_v42 = vadd.s32 %v400_v37, %v399_v38  ;;  %vm403_vm3 = vcmp.lt.s32.totalorder %v401_v39, 48 }
  0x26   : > { %593 = vmatprep.subr.bf16.mxu0 %v803_v2 }
  0x27   : > { %vm404_vm4 = vcmp.lt.s32.totalorder %v402_v42, 48 }
  0x29   : > { %594 = vmatpush3.bf16.msra.mxu0 %v690_v4  ;;  %373 = vadd.xlane.f32.xlu0 %v370_v10 }
  0x2a   : > { %595 = vmatprep.subr.bf16.mxu0 %v803_v2 }
  0x2d   : > { %596 = vmatpush3.bf16.msra.mxu0 %v691_v8 }
  0x2e   : > { %597 = vmatprep.subr.bf16.mxu0 %v803_v2 }
  0x31   : > { %598 = vmatpush3.bf16.msra.mxu0 %v692_v11 }
  0x32   : > { %599 = vmatprep.subr.bf16.mxu0 %v803_v2 }
  0x35   : > { %600 = vmatpush3.bf16.msra.mxu0 %v693_v12 }
  0x36   : > { %601 = vmatprep.subr.bf16.mxu0 %v803_v2 }
  0x39   : > { %602 = vmatpush3.bf16.msra.mxu0 %v694_v13 }
  0x3a   : > { %603 = vmatprep.subr.bf16.mxu0 %v803_v2 }
  0x3d   : > { %604 = vmatpush3.bf16.msra.mxu0 %v695_v14 }
  0x40   : > { %606 = vmatmul.mubr.bf16.vlgmr.msra.gmra.mrb[0].mxu0 %v254_v5 }
  0xb2   : > { %v372_v15 = vpop.xlane.xlu0 %371 }
  0xb3   : > { %v375_v17 = vmax.f32 %v372_v15, 1e-24 }
  0xb5   : > { %698 = vrsqrt.f32 %v375_v17 }
  0xb6   : > { %v374_v16 = vpop.xlane.xlu0 %373 }
  0xb7   : > { %v376_v18 = vmax.f32 %v374_v16, 1e-24 }
  0xb9   : > { %700 = vrsqrt.f32 %v376_v18 }
  0xbf   : > { %v699_v19 = vpop.eup %698 }
  0xc3   : > { %v701_v20 = vpop.eup %700 }
 0x113   : > { %v360_v21 = vpop.f32.mrb[0].mxu0 }
 0x114   : > { %v379_v22 = vmul.f32 %v699_v19, %v360_v21  ;;  %v607_v23 = vpop.f32.mrb[1].mxu0 }
 0x115   : > { %v363_v24 = vpop.f32.mrb[2].mxu0 }
 0x116   : > { %v571_v25 = vadd.f32 -2.0, %v379_v22  ;;  %v380_v26 = vmul.f32 %v701_v20, %v363_v24  ;;  %v608_v27 = vpop.f32.mrb[3].mxu0 }
 0x118   : > { %v383_v28 = vmul.f32 1.442695, %v571_v25  ;;  %v572_v29 = vadd.f32 -2.0, %v380_v26 }
 0x11a   : > { %702 = vpow2.f32 %v383_v28  ;;  %v385_v30 = vmul.f32 1.442695, %v572_v29 }
 0x11c   : > { %704 = vpow2.f32 %v385_v30 }
 0x124   : > { %v703_v31 = vpop.eup %702 }
 0x125   : > { %v388_v32 = vsel %vm387_vm2, %v703_v31, 0.0 }
 0x126   : > { %v705_v33 = vpop.eup %704  ;;  %389 = vadd.xlane.f32.xlu1 %v388_v32 }
 0x127   : > { %v391_v34 = vsel %vm387_vm2, %v705_v33, 0.0 }
 0x12a   : > { %392 = vadd.xlane.f32.xlu1 %v391_v34 }
 0x1b3   : > { %v390_v41 = vpop.xlane.xlu1 %389 }
 0x1b4   : > { %v407_v43 = vmul.f32 %v405_v40, %v390_v41 }
 0x1b6   : > { %v413_v46 = vsel %vm403_vm3, %v407_v43, 0.0 }
 0x1b7   : > { %v393_v45 = vpop.xlane.xlu1 %392  ;;  %v417_v49 = vsel %vm416_vm5, %v413_v46, 0.0 }
 0x1b8   : > { %v408_v47 = vmul.f32 %v406_v44, %v393_v45 }
 0x1ba   : > { %v414_v48 = vsel %vm404_vm4, %v408_v47, 0.0 }
 0x1bb   : > { %v418_v50 = vsel %vm416_vm5, %v414_v48, 0.0 }
 0x1bc   : > { %v419_v51 = vadd.f32 %v418_v50, %v417_v49 }
 0x1be   : > { %v420_v52 = vrot.slane %v419_v51, 4 }
 0x1c0   : > { %v421_v53 = vadd.f32 %v420_v52, %v419_v51 }
 0x1c2   : > { %v422_v54 = vrot.slane %v421_v53, 2 }
 0x1c4   : > { %v423_v55 = vadd.f32 %v422_v54, %v421_v53 }
 0x1c6   : > { %v424_v56 = vrot.slane %v423_v55, 1  ;;  %432 = sbr.rel (%p575_p2) target bundleno = 637 (0x27d), region = 40 }
 0x1c8   : > { %v425_v58 = vadd.f32 %v424_v56, %v423_v55 }
 0x1ca   : > { %v426_v59 = vadd.f32 %v425_v58, %v415_v57 }
 0x1cc   : > { %428 = vst.msk [vmem:[#allocation2] sm:$0x1] %vm427_vm6, %v426_v59 }
 0x1d3   : > { %v436_v60 = vld [vmem:[#allocation2] sm:$0x1] }
 0x1d4   : > { %440 = vrot.lane.b32.xlu0 %v436_v60, %s805_s5  ;;  %609 = vpush %v436_v60 }
 0x205   : > { %s610_s21 = spop %609 }
 0x206   : > { %v446_v63 = vstv %s610_s21 }
 0x246   : > { %v441_v61 = vpop.permute.xlu0 %440 }
 0x247   : > { %611 = vpush %v441_v61 }
 0x278   : > { %s612_s26 = spop %611 }
 0x279   : > { %v444_v0 = vstv %s612_s26 }
 0x27a   : > { %v445_v1 = vsel %vm438_vm7, %v444_v0, 0.0 }
 0x27b   : > { %v447_v2 = vsel %vm435_vm8, %v446_v63, %v445_v1 }
 0x27c   : > { %448 = vst [vmem:[%s222_s29] sm:$0xff] %v447_v2 }
 0x27d PF: > { %s577_s15 = sshll.u32 %s788_s16, 7  ;;  %s463_s6 = sshll.u32 %s222_s29, 4  ;;  %s464_s6 = int_to_ptr.vmem [resolvable:$true] %s463_s6 }
 0x27e   : > { %s952_s30 = scalar_lea.hbm %s1006_s3, %s577_s15  ;;  %s1010_s8 = sand.u32 1, %s776_s13  }
 0x27f   : > { %s450_s9 = scalar_lea.sflag [#allocation4], %s1010_s8  ;;  %s706_s10 = scalar_lea.vmem %s464_s6, 128 }
 0x280   : > { %p707_p4 = scmp.ne.s32.totalorder %s464_s6, %s706_s10  ;;  %s806_s11 = smov [#allocation3]  }
 0x281   : > { %s710_s20 = sshll.u32 %s806_s11, 4  ;;  %s711_s20 = int_to_ptr.vmem [resolvable:$false] %s710_s20 }
 0x282   : > { %p708_p5 = pnand %p707_p4, %p876_p3  ;;  %s712_s5 = scalar_lea.vmem %s711_s20, 256 }
 0x283   : > { %p713_p7 = scmp.lt.s32.totalorder %s464_s6, %s711_s20  ;;  %p714_p8 = scmp.lt.s32.totalorder %s712_s5, %s706_s10 }
 0x284   : > { %p709_p6 = pneg %p708_p5 }
 0x285   : > { %p715_p10 = por %p714_p8, %p713_p7 }
 0x287   : > { %p716_p11 = pnand %p715_p10, %p709_p6 }
 0x289   : > { %719 = shalt.err (!%p716_p11)
}
 0x28a   : > { %s720_s16 = scalar_lea.hbm %s952_s30, 128  ;;  %s724_s21 = scalar_lea.hbm %s1006_s3, 256 }
 0x28b   : > { %p721_p12 = scmp.ne.s32.totalorder %s952_s30, %s720_s16  ;;  %p725_p1 = scmp.lt.u32.totalorder %s952_s30, %s1006_s3 }
 0x28c   : > { %p726_p2 = scmp.lt.u32.totalorder %s724_s21, %s720_s16  ;;  %p728_p5 = scmp.lt.u32.totalorder %s720_s16, %s952_s30 }
 0x28d   : > { %p722_p13 = pnand %p721_p12, %p876_p3 }
 0x28e   : > { %p727_p4 = por %p726_p2, %p725_p1 }
 0x28f   : > { %p723_p0 = pneg %p722_p13 }
 0x290   : > { %p729_p6 = por %p728_p5, %p727_p4 }
 0x292   : > { %p730_p7 = pnand %p729_p6, %p723_p0 }
 0x294   : > { %733 = shalt.err (!%p730_p7)
}
 0x295   : > { %613 = dma.vmem_to_hbm [thread:$0]  (%p876_p3), %s464_s6, 128, %s952_s30, %s450_s9  }
 0x296 PF: > { %p619_p8 = scmp.ge.s32.totalorder %s800_s19, 2  ;;  %s475_s27 = sand.u32 1, %s772_s12  }
 0x297   : > { %s476_s7 = scalar_lea.sflag [#allocation4], %s475_s27 }
 0x298   : > { %p616_p10 = pnand %p619_p8, %p886_p9 }
 0x29a   : > { %767 = dma.done.wait (!%p616_p10), %s476_s7, 128  }
 0x29b   : > { %769 = vsyncadd (!%p616_p10), %s476_s7, 4294967168  ;;  %s16_s19 = sadd.s32 1, %s800_s19   ;;  %s1011_s12 = smov %s776_s13 }
 0x29c   : > { %p13_p11 = scmp.ge.s32.totalorder %s16_s19, 6   ;;  %s1012_s13 = smov %s780_s14 }
 0x29d   : > { %s1013_s14 = smov %s894_s28  ;;  %s1014_s15 = smov %s792_s17 }
 0x29e   : > { %s1015_s16 = smov %s796_s18  ;;  %s1016_s17 = smov %s1019_s22 }
 0x29f   : > { %s1017_s18 = smov %s1023_s23  ;;  %15 = sbr.rel (!%p13_p11) target bundleno = 5 (0x5), region = 78 }
 0x2a6   :  { %481 = vsyncpa [#allocation4], 1 }
 0x2a7   :  { %483 = vsyncpa [#allocation4 + $0x1], 1 }

</bundles_post_ra>
